<compile_context>
chip_gen: v7x
topology: tpu7x:2x2x1
jax: 0.10.0
libtpu: 0.0.40
codegen_flags: <defaults>
</compile_context>

<pallas_src>
import functools
import math

import jax
import jax.numpy as jnp
from jax.experimental import pallas as pl
from jax.experimental.pallas import tpu as pltpu

_LANES = 128


def _round_up(x: int, m: int) -> int:
    return ((x + m - 1) // m) * m


def _cdiv(a: int, b: int) -> int:
    return (a + b - 1) // b


def _get_inputs_fine_kernel(par_ref, ro_ref, rd_ref, rad_ref, dep_ref,
                            trg_ref, means_ref, covs_ref):
    # par_ref : SMEM f32[5] = [t_near, t_far, box_x, box_y, box_z]
    # ro/rd   : VMEM (3, bt, 128)   rays_o / rays_d, channels-major
    # rad/dep/trg : VMEM (1, bt, 128)
    # means/covs  : VMEM (3, bt, 128)
    t_near = par_ref[0]
    t_far = par_ref[1]
    bx = par_ref[2]
    by = par_ref[3]
    bz = par_ref[4]

    radii = rad_ref[0]                      # (bt, 128), fully dense
    depths = dep_ref[0]
    half_rng = 0.5 * trg_ref[0]

    left = jnp.maximum(depths - half_rng, t_near)
    right = jnp.minimum(depths + half_rng, t_far)
    c = 0.5 * (left + right)                # == mean([left, right], -1)
    d = 0.5 * (right - left)

    c2 = c * c
    d2 = d * d
    d4 = d2 * d2
    denom = 3.0 * c2 + d2
    # One shared reciprocal instead of three divides.  Kept exact
    # (approx=False) for the 1e-5/1e-4 tolerance; approx=True would route to
    # the (idle) EUP slot if this kernel is ever fused into compute-bound code.
    inv_denom = pl.reciprocal(denom, approx=False)

    t_mean = c + 2.0 * c * d2 * inv_denom
    t_var = d2 * (1.0 / 3.0) \
        - (4.0 / 15.0) * d4 * (12.0 * c2 - d2) * (inv_denom * inv_denom)
    r_var = (radii * radii) * (0.25 * c2 + (5.0 / 12.0) * d2
                               - (4.0 / 15.0) * d4 * inv_denom)

    rdx = rd_ref[0]
    rdy = rd_ref[1]
    rdz = rd_ref[2]
    rd2x = rdx * rdx
    rd2y = rdy * rdy
    rd2z = rdz * rdz
    # xyz "reduction" is three dense vreg adds (no XLU sublane reduce).
    inv_norm = pl.reciprocal(rd2x + rd2y + rd2z, approx=False)

    # Lane-dense (128-wide, unmasked) stores per channel plane.
    means_ref[0] = (ro_ref[0] - bx) + t_mean * rdx
    means_ref[1] = (ro_ref[1] - by) + t_mean * rdy
    means_ref[2] = (ro_ref[2] - bz) + t_mean * rdz

    covs_ref[0] = t_var * rd2x + r_var * (1.0 - rd2x * inv_norm)
    covs_ref[1] = t_var * rd2y + r_var * (1.0 - rd2y * inv_norm)
    covs_ref[2] = t_var * rd2z + r_var * (1.0 - rd2z * inv_norm)


@functools.partial(jax.jit, static_argnames=("tile_rows", "min_steps"))
def get_inputs_fine(rays_o, rays_d, radii, depths, t_range, t_near, t_far,
                    box_center, *, tile_rows: int = 512, min_steps: int = 4):
    f32 = jnp.float32
    batch_shape = rays_o.shape[:-1]
    n = int(math.prod(batch_shape)) if batch_shape else 1

    if n == 0:  # empty input guard (zero-size grid)
        z = jnp.zeros(batch_shape + (3,), f32)
        return z, z

    n_pad = _round_up(n, _LANES)
    m = n_pad // _LANES                     # rows of 128 lanes

    def vec_cmajor(x):
        # (..., 3) -> (3, m, 128): one XLA transpose copy; pad/reshape fuse.
        x = jnp.asarray(x, f32).reshape(n, 3).T
        if n_pad != n:
            x = jnp.pad(x, ((0, 0), (0, n_pad - n)))
        return x.reshape(3, m, _LANES)

    def scal_rows(x):
        # per-ray scalar ((...,1)/(...)/scalar) -> (1, m, 128); contiguous
        # reshape only, no transpose / no extra HBM traffic.
        x = jnp.asarray(x, f32).reshape(-1)
        if x.size == 1:
            x = jnp.broadcast_to(x, (n,))
        if n_pad != n:
            x = jnp.pad(x, (0, n_pad - n))
        return x.reshape(1, m, _LANES)

    ro = vec_cmajor(rays_o)
    rd = vec_cmajor(rays_d)
    rad = scal_rows(radii)
    dep = scal_rows(depths)
    trg = scal_rows(t_range)

    # TODO(synk): t_near/t_far are treated as broadcast scalars; arbitrary
    # per-ray near/far tensors would need an extra (1, m, 128) kernel input.
    par = jnp.concatenate([
        jnp.asarray(t_near, f32).reshape(1),
        jnp.asarray(t_far, f32).reshape(1),
        jnp.asarray(box_center, f32).reshape(3),
    ])                                       # SMEM f32[5]

    # Tile: up to 512 rows (= 65536 rays/step; ~7.5 MiB double-buffered in
    # this padding-free layout, under every generation's default scoped
    # VMEM), capped so the grid keeps >= min_steps steps so v7x can shard
    # the "parallel" axis across its two TensorCores.
    bt = min(tile_rows, m, _round_up(_cdiv(m, min_steps), 8))
    bt = max(bt, 1)
    grid = (_cdiv(m, bt),)

    cost = pl.CostEstimate(flops=60 * n, transcendentals=0,
                           bytes_accessed=60 * n_pad + 20)

    vec_spec = pl.BlockSpec((3, bt, _LANES), lambda i: (0, i, 0))
    row_spec = pl.BlockSpec((1, bt, _LANES), lambda i: (0, i, 0))

    means_p, covs_p = pl.pallas_call(
        _get_inputs_fine_kernel,
        out_shape=(jax.ShapeDtypeStruct((3, m, _LANES), f32),
                   jax.ShapeDtypeStruct((3, m, _LANES), f32)),
        grid=grid,
        in_specs=[
            pl.BlockSpec(memory_space=pltpu.MemorySpace.SMEM),  # params
            vec_spec,    # rays_o (3, m, 128)
            vec_spec,    # rays_d
            row_spec,    # radii  (1, m, 128)
            row_spec,    # depths
            row_spec,    # t_range
        ],
        out_specs=(vec_spec, vec_spec),
        compiler_params=pltpu.CompilerParams(
            dimension_semantics=("parallel",)),
        cost_estimate=cost,
    )(par, ro, rd, rad, dep, trg)

    means = means_p.reshape(3, n_pad)[:, :n].T.reshape(batch_shape + (3,))
    covs = covs_p.reshape(3, n_pad)[:, :n].T.reshape(batch_shape + (3,))
    return means, covs


class GetInputsFine:
    """Thin stateful wrapper mirroring the torch nn.Module interface."""

    def __init__(self, box_center):
        self.box_center = jnp.asarray(box_center, jnp.float32)

    def __call__(self, rays_o, rays_d, radii, depths, t_range, t_near, t_far):
        return get_inputs_fine(rays_o, rays_d, radii, depths, t_range,
                               t_near, t_far, self.box_center)


def _reference(rays_o, rays_d, radii, depths, t_range, t_near, t_far, box_center):
    """Pure-JAX mirror of the torch forward, on the original layout."""
    rays_o = rays_o - box_center
    radii = jnp.squeeze(radii, axis=-1)
    left = jnp.maximum(depths - t_range * 0.5, t_near)
    right = jnp.minimum(depths + t_range * 0.5, t_far)
    inter = jnp.concatenate([left, right], axis=-1)
    c = jnp.mean(inter, axis=-1)
    d = (inter[..., 1] - inter[..., 0]) / 2.0
    denom = 3.0 * jnp.square(c) + jnp.square(d)
    t_mean = c + (2.0 * c * jnp.square(d)) / denom
    t_var0 = jnp.square(d) / 3.0
    t_var1 = (d ** 4) * (12.0 * jnp.square(c) - jnp.square(d)) / jnp.square(denom)
    t_var = t_var0 - 4.0 / 15.0 * t_var1
    r_var = 4.0 / 15.0 * (d ** 4) / denom
    r_var = jnp.square(radii) * (1.0 / 4.0 * jnp.square(c)
                                 + 5.0 / 12.0 * jnp.square(d) - r_var)
    means = rays_o + t_mean[..., None] * rays_d
    null_outer_diag = 1.0 - jnp.square(rays_d) / jnp.sum(
        jnp.square(rays_d), axis=-1, keepdims=True)
    covs = t_var[..., None] * jnp.square(rays_d) + r_var[..., None] * null_outer_diag
    return means, covs


if __name__ == "__main__":
    key = jax.random.PRNGKey(0)
    k1, k2, k3, k4, k5 = jax.random.split(key, 5)

    batch, rays = 2, 64                      # N = 128 rays total
    rays_o = jax.random.normal(k1, (batch, rays, 3), dtype=jnp.float32)
    rays_d = jax.random.normal(k2, (batch, rays, 3), dtype=jnp.float32)
    rays_d = rays_d / jnp.linalg.norm(rays_d, axis=-1, keepdims=True)
    radii = jax.random.uniform(k3, (batch, rays, 1), dtype=jnp.float32,
                               minval=1e-3, maxval=1e-2)
    depths = jax.random.uniform(k4, (batch, rays, 1), dtype=jnp.float32,
                                minval=1.0, maxval=5.0)
    t_range = jax.random.uniform(k5, (batch, rays, 1), dtype=jnp.float32,
                                 minval=0.1, maxval=0.5)
    t_near = jnp.float32(0.5)
    t_far = jnp.float32(6.0)
    box_center = jnp.array([0.1, -0.2, 0.3], dtype=jnp.float32)

    module = GetInputsFine(box_center)
    means, covs = module(rays_o, rays_d, radii, depths, t_range, t_near, t_far)
    means, covs = jax.block_until_ready((means, covs))

    ref_means, ref_covs = _reference(rays_o, rays_d, radii, depths, t_range,
                                     t_near, t_far, box_center)

    assert means.shape == (batch, rays, 3), means.shape
    assert covs.shape == (batch, rays, 3), covs.shape
    assert jnp.allclose(means, ref_means, atol=1e-5, rtol=1e-4), "means mismatch"
    assert jnp.allclose(covs, ref_covs, atol=1e-5, rtol=1e-4), "covs mismatch"

    print("KERNEL_OK")
</pallas_src>

<mosaic_0001>
module attributes {stable_mosaic.version = 11 : i64} {
  func.func @_get_inputs_fine_kernel(%arg0: i32, %arg1: memref<5xf32, #tpu.memory_space<smem>>, %arg2: memref<3x1x128xf32, #tpu.memory_space<vmem>>, %arg3: memref<3x1x128xf32, #tpu.memory_space<vmem>>, %arg4: memref<1x1x128xf32, #tpu.memory_space<vmem>>, %arg5: memref<1x1x128xf32, #tpu.memory_space<vmem>>, %arg6: memref<1x1x128xf32, #tpu.memory_space<vmem>>, %arg7: memref<3x1x128xf32, #tpu.memory_space<vmem>>, %arg8: memref<3x1x128xf32, #tpu.memory_space<vmem>>) attributes {dimension_semantics = [#tpu.dimension_semantics<parallel>], iteration_bounds = array<i64: 1>, scalar_prefetch = 0 : i64, scratch_operands = 0 : i64, tpu.core_type = #tpu.core_type<tc>, window_params = [{transform_indices = @transform_0, window_bounds = array<i64: 5>}, {transform_indices = @transform_1, window_bounds = array<i64: 3, 1, 128>}, {transform_indices = @transform_2, window_bounds = array<i64: 3, 1, 128>}, {transform_indices = @transform_3, window_bounds = array<i64: 1, 1, 128>}, {transform_indices = @transform_4, window_bounds = array<i64: 1, 1, 128>}, {transform_indices = @transform_5, window_bounds = array<i64: 1, 1, 128>}, {transform_indices = @transform_6, window_bounds = array<i64: 3, 1, 128>}, {transform_indices = @transform_7, window_bounds = array<i64: 3, 1, 128>}]} {
    %c0 = arith.constant 0 : index
    %0 = memref.load %arg1[%c0] : memref<5xf32, #tpu.memory_space<smem>>
    %c1 = arith.constant 1 : index
    %1 = memref.load %arg1[%c1] : memref<5xf32, #tpu.memory_space<smem>>
    %c2 = arith.constant 2 : index
    %2 = memref.load %arg1[%c2] : memref<5xf32, #tpu.memory_space<smem>>
    %c3 = arith.constant 3 : index
    %3 = memref.load %arg1[%c3] : memref<5xf32, #tpu.memory_space<smem>>
    %c4 = arith.constant 4 : index
    %4 = memref.load %arg1[%c4] : memref<5xf32, #tpu.memory_space<smem>>
    %c0_0 = arith.constant 0 : index
    %c0_1 = arith.constant 0 : index
    %c0_2 = arith.constant 0 : index
    %5 = vector.load %arg4[%c0_0, %c0_1, %c0_2] : memref<1x1x128xf32, #tpu.memory_space<vmem>>, vector<1x1x128xf32>
    %6 = vector.shape_cast %5 : vector<1x1x128xf32> to vector<1x128xf32>
    %c0_3 = arith.constant 0 : index
    %c0_4 = arith.constant 0 : index
    %c0_5 = arith.constant 0 : index
    %7 = vector.load %arg5[%c0_3, %c0_4, %c0_5] : memref<1x1x128xf32, #tpu.memory_space<vmem>>, vector<1x1x128xf32>
    %8 = vector.shape_cast %7 : vector<1x1x128xf32> to vector<1x128xf32>
    %c0_6 = arith.constant 0 : index
    %c0_7 = arith.constant 0 : index
    %c0_8 = arith.constant 0 : index
    %9 = vector.load %arg6[%c0_6, %c0_7, %c0_8] : memref<1x1x128xf32, #tpu.memory_space<vmem>>, vector<1x1x128xf32>
    %10 = vector.shape_cast %9 : vector<1x1x128xf32> to vector<1x128xf32>
    %cst = arith.constant 5.000000e-01 : f32
    %11 = vector.broadcast %cst : f32 to vector<1x128xf32>
    %12 = arith.mulf %11, %10 : vector<1x128xf32>
    %13 = arith.subf %8, %12 : vector<1x128xf32>
    %14 = vector.broadcast %0 : f32 to vector<1x128xf32>
    %15 = arith.maximumf %13, %14 : vector<1x128xf32>
    %16 = arith.addf %8, %12 : vector<1x128xf32>
    %17 = vector.broadcast %1 : f32 to vector<1x128xf32>
    %18 = arith.minimumf %16, %17 : vector<1x128xf32>
    %19 = arith.addf %15, %18 : vector<1x128xf32>
    %cst_9 = arith.constant 5.000000e-01 : f32
    %20 = vector.broadcast %cst_9 : f32 to vector<1x128xf32>
    %21 = arith.mulf %20, %19 : vector<1x128xf32>
    %22 = arith.subf %18, %15 : vector<1x128xf32>
    %cst_10 = arith.constant 5.000000e-01 : f32
    %23 = vector.broadcast %cst_10 : f32 to vector<1x128xf32>
    %24 = arith.mulf %23, %22 : vector<1x128xf32>
    %25 = arith.mulf %21, %21 : vector<1x128xf32>
    %26 = arith.mulf %24, %24 : vector<1x128xf32>
    %27 = arith.mulf %26, %26 : vector<1x128xf32>
    %cst_11 = arith.constant 3.000000e+00 : f32
    %28 = vector.broadcast %cst_11 : f32 to vector<1x128xf32>
    %29 = arith.mulf %28, %25 : vector<1x128xf32>
    %30 = arith.addf %29, %26 : vector<1x128xf32>
    %31 = tpu.reciprocal %30 : vector<1x128xf32> -> vector<1x128xf32>
    %cst_12 = arith.constant 2.000000e+00 : f32
    %32 = vector.broadcast %cst_12 : f32 to vector<1x128xf32>
    %33 = arith.mulf %32, %21 : vector<1x128xf32>
    %34 = arith.mulf %33, %26 : vector<1x128xf32>
    %35 = arith.mulf %34, %31 : vector<1x128xf32>
    %36 = arith.addf %21, %35 : vector<1x128xf32>
    %cst_13 = arith.constant 0.333333343 : f32
    %37 = vector.broadcast %cst_13 : f32 to vector<1x128xf32>
    %38 = arith.mulf %26, %37 : vector<1x128xf32>
    %cst_14 = arith.constant 0.266666681 : f32
    %39 = vector.broadcast %cst_14 : f32 to vector<1x128xf32>
    %40 = arith.mulf %39, %27 : vector<1x128xf32>
    %cst_15 = arith.constant 1.200000e+01 : f32
    %41 = vector.broadcast %cst_15 : f32 to vector<1x128xf32>
    %42 = arith.mulf %41, %25 : vector<1x128xf32>
    %43 = arith.subf %42, %26 : vector<1x128xf32>
    %44 = arith.mulf %40, %43 : vector<1x128xf32>
    %45 = arith.mulf %31, %31 : vector<1x128xf32>
    %46 = arith.mulf %44, %45 : vector<1x128xf32>
    %47 = arith.subf %38, %46 : vector<1x128xf32>
    %48 = arith.mulf %6, %6 : vector<1x128xf32>
    %cst_16 = arith.constant 2.500000e-01 : f32
    %49 = vector.broadcast %cst_16 : f32 to vector<1x128xf32>
    %50 = arith.mulf %49, %25 : vector<1x128xf32>
    %cst_17 = arith.constant 0.416666657 : f32
    %51 = vector.broadcast %cst_17 : f32 to vector<1x128xf32>
    %52 = arith.mulf %51, %26 : vector<1x128xf32>
    %53 = arith.addf %50, %52 : vector<1x128xf32>
    %cst_18 = arith.constant 0.266666681 : f32
    %54 = vector.broadcast %cst_18 : f32 to vector<1x128xf32>
    %55 = arith.mulf %54, %27 : vector<1x128xf32>
    %56 = arith.mulf %55, %31 : vector<1x128xf32>
    %57 = arith.subf %53, %56 : vector<1x128xf32>
    %58 = arith.mulf %48, %57 : vector<1x128xf32>
    %c0_19 = arith.constant 0 : index
    %c0_20 = arith.constant 0 : index
    %c0_21 = arith.constant 0 : index
    %59 = vector.load %arg3[%c0_19, %c0_20, %c0_21] : memref<3x1x128xf32, #tpu.memory_space<vmem>>, vector<1x1x128xf32>
    %60 = vector.shape_cast %59 : vector<1x1x128xf32> to vector<1x128xf32>
    %c1_22 = arith.constant 1 : index
    %c0_23 = arith.constant 0 : index
    %c0_24 = arith.constant 0 : index
    %61 = vector.load %arg3[%c1_22, %c0_23, %c0_24] : memref<3x1x128xf32, #tpu.memory_space<vmem>>, vector<1x1x128xf32>
    %62 = vector.shape_cast %61 : vector<1x1x128xf32> to vector<1x128xf32>
    %c2_25 = arith.constant 2 : index
    %c0_26 = arith.constant 0 : index
    %c0_27 = arith.constant 0 : index
    %63 = vector.load %arg3[%c2_25, %c0_26, %c0_27] : memref<3x1x128xf32, #tpu.memory_space<vmem>>, vector<1x1x128xf32>
    %64 = vector.shape_cast %63 : vector<1x1x128xf32> to vector<1x128xf32>
    %65 = arith.mulf %60, %60 : vector<1x128xf32>
    %66 = arith.mulf %62, %62 : vector<1x128xf32>
    %67 = arith.mulf %64, %64 : vector<1x128xf32>
    %68 = arith.addf %65, %66 : vector<1x128xf32>
    %69 = arith.addf %68, %67 : vector<1x128xf32>
    %70 = tpu.reciprocal %69 : vector<1x128xf32> -> vector<1x128xf32>
    %c0_28 = arith.constant 0 : index
    %c0_29 = arith.constant 0 : index
    %c0_30 = arith.constant 0 : index
    %71 = vector.load %arg2[%c0_28, %c0_29, %c0_30] : memref<3x1x128xf32, #tpu.memory_space<vmem>>, vector<1x1x128xf32>
    %72 = vector.shape_cast %71 : vector<1x1x128xf32> to vector<1x128xf32>
    %73 = vector.broadcast %2 : f32 to vector<1x128xf32>
    %74 = arith.subf %72, %73 : vector<1x128xf32>
    %75 = arith.mulf %36, %60 : vector<1x128xf32>
    %76 = arith.addf %74, %75 : vector<1x128xf32>
    %c0_31 = arith.constant 0 : index
    %c0_32 = arith.constant 0 : index
    %c0_33 = arith.constant 0 : index
    %77 = vector.load %arg7[%c0_31, %c0_32, %c0_33] : memref<3x1x128xf32, #tpu.memory_space<vmem>>, vector<1x1x128xf32>
    %78 = vector.shape_cast %77 : vector<1x1x128xf32> to vector<1x128xf32>
    %79 = vector.shape_cast %76 : vector<1x128xf32> to vector<1x1x128xf32>
    tpu.vector_store %arg7[%c0_31, %c0_32, %c0_33], %79 {strides = array<i32>} : memref<3x1x128xf32, #tpu.memory_space<vmem>>, vector<1x1x128xf32>,
    %c1_34 = arith.constant 1 : index
    %c0_35 = arith.constant 0 : index
    %c0_36 = arith.constant 0 : index
    %80 = vector.load %arg2[%c1_34, %c0_35, %c0_36] : memref<3x1x128xf32, #tpu.memory_space<vmem>>, vector<1x1x128xf32>
    %81 = vector.shape_cast %80 : vector<1x1x128xf32> to vector<1x128xf32>
    %82 = vector.broadcast %3 : f32 to vector<1x128xf32>
    %83 = arith.subf %81, %82 : vector<1x128xf32>
    %84 = arith.mulf %36, %62 : vector<1x128xf32>
    %85 = arith.addf %83, %84 : vector<1x128xf32>
    %c1_37 = arith.constant 1 : index
    %c0_38 = arith.constant 0 : index
    %c0_39 = arith.constant 0 : index
    %86 = vector.load %arg7[%c1_37, %c0_38, %c0_39] : memref<3x1x128xf32, #tpu.memory_space<vmem>>, vector<1x1x128xf32>
    %87 = vector.shape_cast %86 : vector<1x1x128xf32> to vector<1x128xf32>
    %88 = vector.shape_cast %85 : vector<1x128xf32> to vector<1x1x128xf32>
    tpu.vector_store %arg7[%c1_37, %c0_38, %c0_39], %88 {strides = array<i32>} : memref<3x1x128xf32, #tpu.memory_space<vmem>>, vector<1x1x128xf32>,
    %c2_40 = arith.constant 2 : index
    %c0_41 = arith.constant 0 : index
    %c0_42 = arith.constant 0 : index
    %89 = vector.load %arg2[%c2_40, %c0_41, %c0_42] : memref<3x1x128xf32, #tpu.memory_space<vmem>>, vector<1x1x128xf32>
    %90 = vector.shape_cast %89 : vector<1x1x128xf32> to vector<1x128xf32>
    %91 = vector.broadcast %4 : f32 to vector<1x128xf32>
    %92 = arith.subf %90, %91 : vector<1x128xf32>
    %93 = arith.mulf %36, %64 : vector<1x128xf32>
    %94 = arith.addf %92, %93 : vector<1x128xf32>
    %c2_43 = arith.constant 2 : index
    %c0_44 = arith.constant 0 : index
    %c0_45 = arith.constant 0 : index
    %95 = vector.load %arg7[%c2_43, %c0_44, %c0_45] : memref<3x1x128xf32, #tpu.memory_space<vmem>>, vector<1x1x128xf32>
    %96 = vector.shape_cast %95 : vector<1x1x128xf32> to vector<1x128xf32>
    %97 = vector.shape_cast %94 : vector<1x128xf32> to vector<1x1x128xf32>
    tpu.vector_store %arg7[%c2_43, %c0_44, %c0_45], %97 {strides = array<i32>} : memref<3x1x128xf32, #tpu.memory_space<vmem>>, vector<1x1x128xf32>,
    %98 = arith.mulf %47, %65 : vector<1x128xf32>
    %99 = arith.mulf %65, %70 : vector<1x128xf32>
    %cst_46 = arith.constant 1.000000e+00 : f32
    %100 = vector.broadcast %cst_46 : f32 to vector<1x128xf32>
    %101 = arith.subf %100, %99 : vector<1x128xf32>
    %102 = arith.mulf %58, %101 : vector<1x128xf32>
    %103 = arith.addf %98, %102 : vector<1x128xf32>
    %c0_47 = arith.constant 0 : index
    %c0_48 = arith.constant 0 : index
    %c0_49 = arith.constant 0 : index
    %104 = vector.load %arg8[%c0_47, %c0_48, %c0_49] : memref<3x1x128xf32, #tpu.memory_space<vmem>>, vector<1x1x128xf32>
    %105 = vector.shape_cast %104 : vector<1x1x128xf32> to vector<1x128xf32>
    %106 = vector.shape_cast %103 : vector<1x128xf32> to vector<1x1x128xf32>
    tpu.vector_store %arg8[%c0_47, %c0_48, %c0_49], %106 {strides = array<i32>} : memref<3x1x128xf32, #tpu.memory_space<vmem>>, vector<1x1x128xf32>,
    %107 = arith.mulf %47, %66 : vector<1x128xf32>
    %108 = arith.mulf %66, %70 : vector<1x128xf32>
    %cst_50 = arith.constant 1.000000e+00 : f32
    %109 = vector.broadcast %cst_50 : f32 to vector<1x128xf32>
    %110 = arith.subf %109, %108 : vector<1x128xf32>
    %111 = arith.mulf %58, %110 : vector<1x128xf32>
    %112 = arith.addf %107, %111 : vector<1x128xf32>
    %c1_51 = arith.constant 1 : index
    %c0_52 = arith.constant 0 : index
    %c0_53 = arith.constant 0 : index
    %113 = vector.load %arg8[%c1_51, %c0_52, %c0_53] : memref<3x1x128xf32, #tpu.memory_space<vmem>>, vector<1x1x128xf32>
    %114 = vector.shape_cast %113 : vector<1x1x128xf32> to vector<1x128xf32>
    %115 = vector.shape_cast %112 : vector<1x128xf32> to vector<1x1x128xf32>
    tpu.vector_store %arg8[%c1_51, %c0_52, %c0_53], %115 {strides = array<i32>} : memref<3x1x128xf32, #tpu.memory_space<vmem>>, vector<1x1x128xf32>,
    %116 = arith.mulf %47, %67 : vector<1x128xf32>
    %117 = arith.mulf %67, %70 : vector<1x128xf32>
    %cst_54 = arith.constant 1.000000e+00 : f32
    %118 = vector.broadcast %cst_54 : f32 to vector<1x128xf32>
    %119 = arith.subf %118, %117 : vector<1x128xf32>
    %120 = arith.mulf %58, %119 : vector<1x128xf32>
    %121 = arith.addf %116, %120 : vector<1x128xf32>
    %c2_55 = arith.constant 2 : index
    %c0_56 = arith.constant 0 : index
    %c0_57 = arith.constant 0 : index
    %122 = vector.load %arg8[%c2_55, %c0_56, %c0_57] : memref<3x1x128xf32, #tpu.memory_space<vmem>>, vector<1x1x128xf32>
    %123 = vector.shape_cast %122 : vector<1x1x128xf32> to vector<1x128xf32>
    %124 = vector.shape_cast %121 : vector<1x128xf32> to vector<1x1x128xf32>
    tpu.vector_store %arg8[%c2_55, %c0_56, %c0_57], %124 {strides = array<i32>} : memref<3x1x128xf32, #tpu.memory_space<vmem>>, vector<1x1x128xf32>,
    return
  }
  func.func @transform_0(%arg0: i32) -> i32 {
    %c0_i32 = arith.constant 0 : i32
    %c0_i32_0 = arith.constant 0 : i32
    return %c0_i32 : i32
  }
  func.func @transform_1(%arg0: i32) -> (i32, i32, i32) {
    %c0_i32 = arith.constant 0 : i32
    %c0_i32_0 = arith.constant 0 : i32
    %c0_i32_1 = arith.constant 0 : i32
    return %c0_i32, %arg0, %c0_i32_0 : i32, i32, i32
  }
  func.func @transform_2(%arg0: i32) -> (i32, i32, i32) {
    %c0_i32 = arith.constant 0 : i32
    %c0_i32_0 = arith.constant 0 : i32
    %c0_i32_1 = arith.constant 0 : i32
    return %c0_i32, %arg0, %c0_i32_0 : i32, i32, i32
  }
  func.func @transform_3(%arg0: i32) -> (i32, i32, i32) {
    %c0_i32 = arith.constant 0 : i32
    %c0_i32_0 = arith.constant 0 : i32
    %c0_i32_1 = arith.constant 0 : i32
    return %c0_i32, %arg0, %c0_i32_0 : i32, i32, i32
  }
  func.func @transform_4(%arg0: i32) -> (i32, i32, i32) {
    %c0_i32 = arith.constant 0 : i32
    %c0_i32_0 = arith.constant 0 : i32
    %c0_i32_1 = arith.constant 0 : i32
    return %c0_i32, %arg0, %c0_i32_0 : i32, i32, i32
  }
  func.func @transform_5(%arg0: i32) -> (i32, i32, i32) {
    %c0_i32 = arith.constant 0 : i32
    %c0_i32_0 = arith.constant 0 : i32
    %c0_i32_1 = arith.constant 0 : i32
    return %c0_i32, %arg0, %c0_i32_0 : i32, i32, i32
  }
  func.func @transform_6(%arg0: i32) -> (i32, i32, i32) {
    %c0_i32 = arith.constant 0 : i32
    %c0_i32_0 = arith.constant 0 : i32
    %c0_i32_1 = arith.constant 0 : i32
    return %c0_i32, %arg0, %c0_i32_0 : i32, i32, i32
  }
  func.func @transform_7(%arg0: i32) -> (i32, i32, i32) {
    %c0_i32 = arith.constant 0 : i32
    %c0_i32_0 = arith.constant 0 : i32
    %c0_i32_1 = arith.constant 0 : i32
    return %c0_i32, %arg0, %c0_i32_0 : i32, i32, i32
  }
}

</mosaic_0001>

<bundles_post_ra>
// kernel: get_inputs_fine.1
= control target key start
LH: loop header
LB: loop body
LE: loop exit
PB: predicated region body
PF: predicated region fallthrough
CT: control target
= control target key end

     0   :  { %13 = vsyncpa [#allocation3], 0  ;;  %s289_s0 = inlined_call_operand.vmem [shape: f32[5], index: 0, kind: input, shape index: {}]   ;;  %s290_s1 = inlined_call_operand.vmem [shape: f32[3,1,128], index: 1, kind: input, shape index: {}]   ;;  %s291_s2 = inlined_call_operand.vmem [shape: f32[3,1,128], index: 2, kind: input, shape index: {}]   ;;  %s292_s3 = inlined_call_operand.vmem [shape: f32[1,1,128], index: 3, kind: input, shape index: {}]   ;;  %s293_s4 = inlined_call_operand.vmem [shape: f32[1,1,128], index: 4, kind: input, shape index: {}]   ;;  %s294_s5 = inlined_call_operand.vmem [shape: f32[1,1,128], index: 5, kind: input, shape index: {}]   ;;  %s295_s6 = inlined_call_operand.vmem [shape: f32[3,1,128], index: 6, kind: output, shape index: {0}]   ;;  %s296_s7 = inlined_call_operand.vmem [shape: f32[3,1,128], index: 7, kind: output, shape index: {1}]  }
   0x1   :  { %s20_s26 = sshll.u32 %s289_s0, 4  ;;  %s21_s26 = int_to_ptr.vmem [resolvable:$true] %s20_s26 }
   0x2   :  { %s161_s27 = scalar_lea.vmem %s21_s26, 16  ;;  %p166_p1 = scmp.lt.s32.totalorder %s21_s26, %s21_s26 }
   0x3   :  { %p162_p0 = scmp.ne.s32.totalorder %s21_s26, %s161_s27  ;;  %p167_p2 = scmp.lt.s32.totalorder %s161_s27, %s161_s27 }
   0x5   :  { %p168_p3 = por %p167_p2, %p166_p1 }
   0x7   :  { %p169_p4 = pnand %p168_p3, %p162_p0 }
   0x9   :  { %172 = shalt.err (!%p169_p4)
}
   0xa   :  { %s175_s28 = smov [#allocation2]  }
   0xb   :  { %23 = dma.vmem_to_smem %s21_s26, 16, %s175_s28, [#allocation3]  }
   0xc   :  { %173 = dma.done.wait [#allocation3], 16  }
   0xd   :  { %174 = vsyncadd [#allocation3], 4294967280 }
   0xe   :  { %37 = sfence }
   0xf   :  { %s38_s29 = sld [smem:[#allocation2]]  ;;  %s144_s30 = sld [smem:[#allocation2 + $0x1]]  ;;  %v44_v0 = vld [vmem:[%s293_s4] sm:$0x1]  ;;  %v233_v4 = vld [vmem:[%s291_s2 + $0x1] sm:$0x1] }
  0x10   :  { %v45_v1 = vld [vmem:[%s294_s5] sm:$0x1]  ;;  %v241_v8 = vmul.f32 %v233_v4, %v233_v4  ;;  %v149_v9 = vld [vmem:[%s291_s2 + $0x2] sm:$0x1]  ;;  %s146_s15 = sld [smem:[#allocation2 + $0x3]]  ;;  %s147_s16 = sld [smem:[#allocation2 + $0x4]] }
  0x11   :  { %v228_v2 = vld [vmem:[%s291_s2] sm:$0x1]  ;;  %v46_v3 = vmul.f32 0.5, %v45_v1  ;;  %v248_v15 = vmul.f32 %v149_v9, %v149_v9  ;;  %s145_s2 = sld [smem:[#allocation2 + $0x2]]  ;;  %v150_v36 = vld [vmem:[%s290_s1 + $0x1] sm:$0x1] }
  0x12   :  { %v237_v7 = vmul.f32 %v228_v2, %v228_v2  ;;  %v93_v34 = vld [vmem:[%s290_s1] sm:$0x1]  ;;  %v152_v42 = vld [vmem:[%s290_s1 + $0x2] sm:$0x1] }
  0x13   :  { %v47_v5 = vsub.f32 %v44_v0, %v46_v3  ;;  %v50_v6 = vadd.f32 %v46_v3, %v44_v0  ;;  %v43_v38 = vld [vmem:[%s292_s3] sm:$0x1] }
  0x14   :  { %v90_v14 = vadd.f32 %v241_v8, %v237_v7  ;;  %v75_v53 = vmul.f32 %v43_v38, %v43_v38 }
  0x15   :  { %v48_v10 = vstv %s38_s29  ;;  %v51_v11 = vstv %s144_s30 }
  0x16   :  { %v49_v12 = vmax.f32 %v47_v5, %v48_v10  ;;  %v52_v13 = vmin.f32 %v50_v6, %v51_v11  ;;  %v91_v20 = vadd.f32 %v90_v14, %v248_v15  ;;  %v101_v37 = vstv %s146_s15 }
  0x17   :  { %v94_v35 = vstv %s145_s2  ;;  %v109_v43 = vstv %s147_s16  ;;  %v102_v52 = vsub.f32 %v150_v36, %v101_v37 }
  0x18   :  { %v53_v16 = vadd.f32 %v52_v13, %v49_v12  ;;  %v55_v17 = vsub.f32 %v52_v13, %v49_v12  ;;  %157 = vrcp.f32 %v91_v20  ;;  %v95_v51 = vsub.f32 %v93_v34, %v94_v35 }
  0x19   :  { %v110_v55 = vsub.f32 %v152_v42, %v109_v43 }
  0x1a   :  { %v54_v18 = vmul.f32 0.5, %v53_v16  ;;  %v56_v19 = vmul.f32 0.5, %v55_v17 }
  0x1c   :  { %v57_v21 = vmul.f32 %v54_v18, %v54_v18  ;;  %v58_v22 = vmul.f32 %v56_v19, %v56_v19  ;;  %v63_v27 = vmul.f32 2.0, %v54_v18 }
  0x1e   :  { %v60_v23 = vmul.f32 3.0, %v57_v21  ;;  %v59_v25 = vmul.f32 %v58_v22, %v58_v22  ;;  %v69_v26 = vmul.f32 12.0, %v57_v21  ;;  %v76_v30 = vmul.f32 0.25, %v57_v21 }
  0x1f   :  { %v77_v31 = vmul.f32 0.41666666, %v58_v22  ;;  %v64_v33 = vmul.f32 %v63_v27, %v58_v22  ;;  %v67_v48 = vmul.f32 0.33333334, %v58_v22 }
  0x20   :  { %v61_v24 = vadd.f32 %v60_v23, %v58_v22  ;;  %v68_v28 = vmul.f32 0.26666668, %v59_v25  ;;  %v70_v29 = vsub.f32 %v69_v26, %v58_v22 }
  0x21   :  { %v78_v40 = vadd.f32 %v77_v31, %v76_v30 }
  0x22   :  { %159 = vrcp.f32 %v61_v24  ;;  %v158_v32 = vpop.eup %157  ;;  %v71_v39 = vmul.f32 %v70_v29, %v68_v28 }
  0x23   :  { %v116_v44 = vmul.f32 %v158_v32, %v237_v7  ;;  %v122_v45 = vmul.f32 %v158_v32, %v241_v8  ;;  %v129_v46 = vmul.f32 %v158_v32, %v248_v15 }
  0x25   :  { %v117_v58 = vsub.f32 1.0, %v116_v44  ;;  %v123_v59 = vsub.f32 1.0, %v122_v45  ;;  %v130_v60 = vsub.f32 1.0, %v129_v46 }
  0x2c   :  { %v160_v41 = vpop.eup %159 }
  0x2d   :  { %v65_v47 = vmul.f32 %v160_v41, %v64_v33  ;;  %v72_v49 = vmul.f32 %v160_v41, %v160_v41  ;;  %v79_v50 = vmul.f32 %v160_v41, %v68_v28 }
  0x2f   :  { %v66_v54 = vadd.f32 %v65_v47, %v54_v18  ;;  %v73_v56 = vmul.f32 %v72_v49, %v71_v39  ;;  %v80_v57 = vsub.f32 %v78_v40, %v79_v50 }
  0x31   :  { %v96_v61 = vmul.f32 %v228_v2, %v66_v54  ;;  %v103_v62 = vmul.f32 %v233_v4, %v66_v54  ;;  %v111_v63 = vmul.f32 %v149_v9, %v66_v54  ;;  %v74_v0 = vsub.f32 %v67_v48, %v73_v56 }
  0x32   :  { %v81_v1 = vmul.f32 %v80_v57, %v75_v53 }
  0x33   :  { %v97_v3 = vadd.f32 %v96_v61, %v95_v51  ;;  %v104_v5 = vadd.f32 %v103_v62, %v102_v52  ;;  %v112_v6 = vadd.f32 %v111_v63, %v110_v55  ;;  %v115_v10 = vmul.f32 %v237_v7, %v74_v0 }
  0x34   :  { %v118_v11 = vmul.f32 %v117_v58, %v81_v1  ;;  %v121_v12 = vmul.f32 %v241_v8, %v74_v0  ;;  %v124_v13 = vmul.f32 %v123_v59, %v81_v1  ;;  %v128_v14 = vmul.f32 %v248_v15, %v74_v0 }
  0x35   :  { %98 = vst [vmem:[%s295_s6] sm:$0x1] %v97_v3  ;;  %151 = vst [vmem:[%s295_s6 + $0x1] sm:$0x1] %v104_v5  ;;  %v131_v2 = vmul.f32 %v130_v60, %v81_v1 }
  0x36   :  { %153 = vst [vmem:[%s295_s6 + $0x2] sm:$0x1] %v112_v6  ;;  %v119_v4 = vadd.f32 %v118_v11, %v115_v10  ;;  %v125_v7 = vadd.f32 %v124_v13, %v121_v12 }
  0x37   :  { %v132_v9 = vadd.f32 %v131_v2, %v128_v14 }
  0x38   :  { %120 = vst [vmem:[%s296_s7] sm:$0x1] %v119_v4  ;;  %154 = vst [vmem:[%s296_s7 + $0x1] sm:$0x1] %v125_v7 }
  0x39   :  { %155 = vst [vmem:[%s296_s7 + $0x2] sm:$0x1] %v132_v9 }
  0x3a   :  { %143 = vsyncpa [#allocation3], 1 }

</bundles_post_ra>
